<compile_context>
chip_gen: v5e
topology: v5e:2x2
jax: 0.10.0
libtpu: 0.0.40
codegen_flags: <defaults>
</compile_context>

<pallas_src>
from functools import partial

import numpy as np
import jax
import jax.numpy as jnp
from jax import lax
from jax.experimental import pallas as pl
from jax.experimental.pallas import tpu as pltpu

GRAY_R, GRAY_G, GRAY_B = 0.2989, 0.587, 0.114
LUMA = (GRAY_R, GRAY_G, GRAY_B)
LUMA_SUM = GRAY_R + GRAY_G + GRAY_B       # grayscale is linear -> fold before norm
INV_SQRT2 = 0.7071067811865476

# nn.Conv1d(2,1,1,bias=False) weight from __init__ (only used in the datt branch).
RPCONV1D_WEIGHT = np.array([[[1.0], [0.0]]], dtype=np.float32)
# TODO(synk): the `datt is not None` branch (maxpool-to-size + elementwise attention
# + 1x1 conv1d merge) is unused on the datt=None path and is not implemented.


def _vmem_limit(block_bytes: int) -> int:
    # double-buffered blocks + headroom, clamped to a sane scoped-VMEM request.
    need = 2 * block_bytes + (4 << 20)
    return int(min(max(need, 16 << 20), 64 << 20))


@partial(jax.jit, static_argnums=(1,))
def frp_forward(x: jax.Array, w: int) -> jax.Array:
    """FRP_Module.forward(x, datt=None). x: (B, C=3, T, H, W)."""
    if w < 1:
        return x
    B, C, T, H, W = x.shape
    assert C == 3, "Grayscale(1) path requires 3 input channels"
    HW = H * W
    T_out = T + w - 1
    n_off = min(w, T)          # window offsets that can ever hit a real frame

    # Only a free relayout in the wrapper: (B,C,T,H,W) -> (B,C,T,HW).
    # No dtype cast here (that would cost a full extra HBM pass); cast in VMEM.
    xk = x.reshape(B, C, T, HW)

    # ---- kernel A: rank-pool + GELU + grayscale + per-frame min/max, per batch ----
    def pool_kernel(x_ref, slab_ref, mn_ref, mx_ref):
        # Rank-pool weights per window offset j, generated from iota.
        # wplanes[j][i] = 2*(j+1) - N_i - 1 with N_i = min(w, T - i), zeroed for
        # i >= T - j so the cyclic roll's wrap-around rows contribute exactly 0.
        ii = lax.broadcasted_iota(jnp.int32, (T, 1), 0)
        n_i = jnp.minimum(w, T - ii)
        wplanes = []
        for j in range(n_off):
            wj = (2 * (j + 1) - n_i - 1).astype(jnp.float32)
            wj = jnp.where(ii < T - j, wj, 0.0)
            # Hoisted broadcast: emitted once, reused by every channel plane.
            wplanes.append(jnp.broadcast_to(wj, (T, HW)))

        gray = jnp.zeros((T, HW), jnp.float32)
        mn = jnp.full((T, 1), jnp.inf, dtype=jnp.float32)
        mx = jnp.full((T, 1), -jnp.inf, dtype=jnp.float32)
        for c in range(C):
            xc = x_ref[0, c].astype(jnp.float32)           # (T, HW), cast in VMEM
            # Window-restricted weighted sum, O(T*w), accumulated in vregs.
            # Shifted copies are whole-tile sublane rotations (XLU slot), so every
            # load / FMA is an unmasked whole-vreg op (no scratch RMW chain).
            acc = wplanes[0] * xc
            for j in range(1, n_off):
                shifted = pltpu.roll(xc, T - j, 0)          # shifted[i] = xc[(i+j) % T]
                acc = acc + wplanes[j] * shifted
            # Exact (erf) GELU, matching torch.nn.functional.gelu default.
            p = 0.5 * acc * (1.0 + lax.erf(acc * INV_SQRT2))
            # Per-frame stats (lane reductions) and grayscale accumulation.
            mn = jnp.minimum(mn, jnp.min(p, axis=1, keepdims=True))
            mx = jnp.maximum(mx, jnp.max(p, axis=1, keepdims=True))
            gray = gray + LUMA[c] * p

        # One aligned full-tile store per batch: leading zero "mask" frames are
        # concatenated in registers so the store starts at sublane 0.
        if w > 1:
            slab = jnp.concatenate(
                [jnp.zeros((w - 1, HW), jnp.float32), gray], axis=0)
        else:
            slab = gray
        slab_ref[0] = slab
        mn_ref[0] = mn
        mx_ref[0] = mx

    in_block = C * T * HW * x.dtype.itemsize
    slab_block = T_out * HW * 4
    slab, mn_b, mx_b = pl.pallas_call(
        pool_kernel,
        out_shape=(
            jax.ShapeDtypeStruct((B, T_out, HW), jnp.float32),
            jax.ShapeDtypeStruct((B, T, 1), jnp.float32),
            jax.ShapeDtypeStruct((B, T, 1), jnp.float32),
        ),
        grid_spec=pltpu.PrefetchScalarGridSpec(
            num_scalar_prefetch=0,
            grid=(B,),   # per-batch steps: pipelined DMA + both TCs on v7x
            in_specs=[pl.BlockSpec((1, C, T, HW), lambda b: (b, 0, 0, 0))],
            out_specs=[
                pl.BlockSpec((1, T_out, HW), lambda b: (b, 0, 0)),
                pl.BlockSpec((1, T, 1), lambda b: (b, 0, 0)),
                pl.BlockSpec((1, T, 1), lambda b: (b, 0, 0)),
            ],
        ),
        compiler_params=pltpu.CompilerParams(
            dimension_semantics=("parallel",),
            vmem_limit_bytes=_vmem_limit(in_block + slab_block),
        ),
    )(xk)

    # ---- tiny cross-batch stat resolve (B*T scalars, plain XLA) -------------------
    mn = jnp.min(mn_b, axis=0)                 # (T, 1) per-frame min over (B, C, HW)
    mx = jnp.max(mx_b, axis=0)                 # (T, 1) per-frame max over (B, C, HW)
    rng = mx - mn
    denom = jnp.where(rng != 0.0, rng, jnp.float32(1e-5))
    scale = 1.0 / denom
    # gray is linear: gray((p - mn) / d) == (gray(p) - LUMA_SUM * mn) / d
    sub = LUMA_SUM * mn
    if w > 1:                                  # identity rows for the zero mask frames
        scale = jnp.concatenate([jnp.ones((w - 1, 1), jnp.float32), scale], axis=0)
        sub = jnp.concatenate([jnp.zeros((w - 1, 1), jnp.float32), sub], axis=0)

    # ---- kernel B: in-place per-frame normalization of the slab -------------------
    def norm_kernel(scale_ref, sub_ref, slab_ref, o_ref):
        o_ref[0] = (slab_ref[0] - sub_ref[...]) * scale_ref[...]

    out = pl.pallas_call(
        norm_kernel,
        out_shape=jax.ShapeDtypeStruct((B, T_out, HW), jnp.float32),
        grid_spec=pltpu.PrefetchScalarGridSpec(
            num_scalar_prefetch=0,
            grid=(B,),
            in_specs=[
                pl.BlockSpec((T_out, 1), lambda b: (0, 0)),
                pl.BlockSpec((T_out, 1), lambda b: (0, 0)),
                pl.BlockSpec((1, T_out, HW), lambda b: (b, 0, 0)),
            ],
            out_specs=pl.BlockSpec((1, T_out, HW), lambda b: (b, 0, 0)),
        ),
        input_output_aliases={2: 0},           # normalize the slab buffer in place
        compiler_params=pltpu.CompilerParams(
            dimension_semantics=("parallel",),
            vmem_limit_bytes=_vmem_limit(2 * slab_block),
        ),
    )(scale, sub, slab)

    # Free reshape to (B, 1, T+w-1, H, W); zero mask frames already in place.
    return out.reshape(B, 1, T_out, H, W)


def frp_reference(x: jax.Array, w: int) -> jax.Array:
    """Pure-JAX reference following the torch op order exactly."""
    if w < 1:
        return x
    B, C, T, H, W = x.shape
    x = x.astype(jnp.float32)
    frames = [x[:, :, t] for t in range(T)]
    outs = []
    for i in range(T):
        win = frames[i:i + w]
        N = len(win)
        ws = [float(j + 1) * 2 - N - 1 for j in range(N)]
        re = sum(a * b for a, b in zip(win, ws))
        re = 0.5 * re * (1.0 + lax.erf(re * INV_SQRT2))
        re = re - jnp.min(re)
        m = jnp.max(re)
        denom = jnp.where(m != 0.0, m, m + 1e-5)
        re = re / denom
        gray = GRAY_R * re[:, 0] + GRAY_G * re[:, 1] + GRAY_B * re[:, 2]
        outs.append(gray[:, None])                    # (B, 1, H, W)
    merged = jnp.stack(outs, axis=2)                  # (B, 1, T, H, W)
    mask = jnp.zeros((B, 1, w - 1, H, W), merged.dtype)
    return jnp.concatenate([mask, merged], axis=2)


if __name__ == "__main__":
    key = jax.random.PRNGKey(0)
    B, C, T, H, W = 2, 3, 8, 16, 16   # C=3 required by Grayscale(1)
    w = 4
    x = jax.random.normal(key, (B, C, T, H, W), dtype=jnp.float32)

    y = jax.block_until_ready(frp_forward(x, w))
    y_ref = frp_reference(x, w)

    assert y.shape == (B, 1, T + w - 1, H, W), y.shape
    np.testing.assert_allclose(np.asarray(y), np.asarray(y_ref), rtol=1e-5, atol=1e-5)
    print("KERNEL_OK")
</pallas_src>

<mosaic_0001>
module attributes {stable_mosaic.version = 11 : i64} {
  func.func @pool_kernel(%arg0: i32, %arg1: memref<1x3x8x256xf32, #tpu.memory_space<vmem>>, %arg2: memref<1x11x256xf32, #tpu.memory_space<vmem>>, %arg3: memref<1x8x1xf32, #tpu.memory_space<vmem>>, %arg4: memref<1x8x1xf32, #tpu.memory_space<vmem>>) attributes {dimension_semantics = [#tpu.dimension_semantics<parallel>], iteration_bounds = array<i64: 2>, scalar_prefetch = 0 : i64, scratch_operands = 0 : i64, tpu.core_type = #tpu.core_type<tc>, window_params = [{transform_indices = @transform_0, window_bounds = array<i64: 1, 3, 8, 256>}, {transform_indices = @transform_1, window_bounds = array<i64: 1, 11, 256>}, {transform_indices = @transform_2, window_bounds = array<i64: 1, 8, 1>}, {transform_indices = @transform_3, window_bounds = array<i64: 1, 8, 1>}]} {
    %0 = tpu.iota {dimensions = array<i32: 0>} : vector<8x1xi32>
    %c8_i32 = arith.constant 8 : i32
    %1 = vector.broadcast %c8_i32 : i32 to vector<8x1xi32>
    %2 = arith.subi %1, %0 : vector<8x1xi32>
    %c4_i32 = arith.constant 4 : i32
    %3 = vector.broadcast %c4_i32 : i32 to vector<8x1xi32>
    %4 = arith.minsi %3, %2 : vector<8x1xi32>
    %c2_i32 = arith.constant 2 : i32
    %5 = vector.broadcast %c2_i32 : i32 to vector<8x1xi32>
    %6 = arith.subi %5, %4 : vector<8x1xi32>
    %c1_i32 = arith.constant 1 : i32
    %7 = vector.broadcast %c1_i32 : i32 to vector<8x1xi32>
    %8 = arith.subi %6, %7 : vector<8x1xi32>
    %9 = arith.sitofp %8 : vector<8x1xi32> to vector<8x1xf32>
    %c8_i32_0 = arith.constant 8 : i32
    %10 = vector.broadcast %c8_i32_0 : i32 to vector<8x1xi32>
    %11 = arith.cmpi slt, %0, %10 : vector<8x1xi32>
    %cst = arith.constant 0.000000e+00 : f32
    %12 = vector.broadcast %cst : f32 to vector<8x1xf32>
    %13 = arith.select %11, %9, %12 : vector<8x1xi1>, vector<8x1xf32>
    %14 = vector.shape_cast %13 : vector<8x1xf32> to vector<8x1xf32>
    %15 = vector.broadcast %14 : vector<8x1xf32> to vector<8x256xf32>
    %c4_i32_1 = arith.constant 4 : i32
    %16 = vector.broadcast %c4_i32_1 : i32 to vector<8x1xi32>
    %17 = arith.subi %16, %4 : vector<8x1xi32>
    %c1_i32_2 = arith.constant 1 : i32
    %18 = vector.broadcast %c1_i32_2 : i32 to vector<8x1xi32>
    %19 = arith.subi %17, %18 : vector<8x1xi32>
    %20 = arith.sitofp %19 : vector<8x1xi32> to vector<8x1xf32>
    %c7_i32 = arith.constant 7 : i32
    %21 = vector.broadcast %c7_i32 : i32 to vector<8x1xi32>
    %22 = arith.cmpi slt, %0, %21 : vector<8x1xi32>
    %cst_3 = arith.constant 0.000000e+00 : f32
    %23 = vector.broadcast %cst_3 : f32 to vector<8x1xf32>
    %24 = arith.select %22, %20, %23 : vector<8x1xi1>, vector<8x1xf32>
    %25 = vector.shape_cast %24 : vector<8x1xf32> to vector<8x1xf32>
    %26 = vector.broadcast %25 : vector<8x1xf32> to vector<8x256xf32>
    %c6_i32 = arith.constant 6 : i32
    %27 = vector.broadcast %c6_i32 : i32 to vector<8x1xi32>
    %28 = arith.subi %27, %4 : vector<8x1xi32>
    %c1_i32_4 = arith.constant 1 : i32
    %29 = vector.broadcast %c1_i32_4 : i32 to vector<8x1xi32>
    %30 = arith.subi %28, %29 : vector<8x1xi32>
    %31 = arith.sitofp %30 : vector<8x1xi32> to vector<8x1xf32>
    %c6_i32_5 = arith.constant 6 : i32
    %32 = vector.broadcast %c6_i32_5 : i32 to vector<8x1xi32>
    %33 = arith.cmpi slt, %0, %32 : vector<8x1xi32>
    %cst_6 = arith.constant 0.000000e+00 : f32
    %34 = vector.broadcast %cst_6 : f32 to vector<8x1xf32>
    %35 = arith.select %33, %31, %34 : vector<8x1xi1>, vector<8x1xf32>
    %36 = vector.shape_cast %35 : vector<8x1xf32> to vector<8x1xf32>
    %37 = vector.broadcast %36 : vector<8x1xf32> to vector<8x256xf32>
    %c8_i32_7 = arith.constant 8 : i32
    %38 = vector.broadcast %c8_i32_7 : i32 to vector<8x1xi32>
    %39 = arith.subi %38, %4 : vector<8x1xi32>
    %c1_i32_8 = arith.constant 1 : i32
    %40 = vector.broadcast %c1_i32_8 : i32 to vector<8x1xi32>
    %41 = arith.subi %39, %40 : vector<8x1xi32>
    %42 = arith.sitofp %41 : vector<8x1xi32> to vector<8x1xf32>
    %c5_i32 = arith.constant 5 : i32
    %43 = vector.broadcast %c5_i32 : i32 to vector<8x1xi32>
    %44 = arith.cmpi slt, %0, %43 : vector<8x1xi32>
    %cst_9 = arith.constant 0.000000e+00 : f32
    %45 = vector.broadcast %cst_9 : f32 to vector<8x1xf32>
    %46 = arith.select %44, %42, %45 : vector<8x1xi1>, vector<8x1xf32>
    %47 = vector.shape_cast %46 : vector<8x1xf32> to vector<8x1xf32>
    %48 = vector.broadcast %47 : vector<8x1xf32> to vector<8x256xf32>
    %cst_10 = arith.constant 0.000000e+00 : f32
    %49 = vector.broadcast %cst_10 : f32 to vector<8x256xf32>
    %cst_11 = arith.constant 0x7F800000 : f32
    %50 = vector.broadcast %cst_11 : f32 to vector<8x1xf32>
    %cst_12 = arith.constant 0xFF800000 : f32
    %51 = vector.broadcast %cst_12 : f32 to vector<8x1xf32>
    %c0 = arith.constant 0 : index
    %c0_13 = arith.constant 0 : index
    %c0_14 = arith.constant 0 : index
    %c0_15 = arith.constant 0 : index
    %52 = vector.load %arg1[%c0, %c0_13, %c0_14, %c0_15] : memref<1x3x8x256xf32, #tpu.memory_space<vmem>>, vector<1x1x8x256xf32>
    %53 = vector.shape_cast %52 : vector<1x1x8x256xf32> to vector<8x256xf32>
    %54 = arith.mulf %15, %53 : vector<8x256xf32>
    %c7_i32_16 = arith.constant 7 : i32
    %55 = tpu.dynamic_rotate %53 by %c7_i32_16 dim 0 : vector<8x256xf32>, i32 -> vector<8x256xf32>
    %56 = arith.mulf %26, %55 : vector<8x256xf32>
    %57 = arith.addf %54, %56 : vector<8x256xf32>
    %c6_i32_17 = arith.constant 6 : i32
    %58 = tpu.dynamic_rotate %53 by %c6_i32_17 dim 0 : vector<8x256xf32>, i32 -> vector<8x256xf32>
    %59 = arith.mulf %37, %58 : vector<8x256xf32>
    %60 = arith.addf %57, %59 : vector<8x256xf32>
    %c5_i32_18 = arith.constant 5 : i32
    %61 = tpu.dynamic_rotate %53 by %c5_i32_18 dim 0 : vector<8x256xf32>, i32 -> vector<8x256xf32>
    %62 = arith.mulf %48, %61 : vector<8x256xf32>
    %63 = arith.addf %60, %62 : vector<8x256xf32>
    %cst_19 = arith.constant 5.000000e-01 : f32
    %64 = vector.broadcast %cst_19 : f32 to vector<8x256xf32>
    %65 = arith.mulf %64, %63 : vector<8x256xf32>
    %cst_20 = arith.constant 0.707106769 : f32
    %66 = vector.broadcast %cst_20 : f32 to vector<8x256xf32>
    %67 = arith.mulf %63, %66 : vector<8x256xf32>
    %68 = math.erf %67 : vector<8x256xf32>
    %cst_21 = arith.constant 1.000000e+00 : f32
    %69 = vector.broadcast %cst_21 : f32 to vector<8x256xf32>
    %70 = arith.addf %69, %68 : vector<8x256xf32>
    %71 = arith.mulf %65, %70 : vector<8x256xf32>
    %cst_22 = arith.constant dense<0x7F800000> : vector<8xf32>
    %72 = vector.multi_reduction <minimumf>, %71, %cst_22 [1] : vector<8x256xf32> to vector<8xf32>
    %73 = vector.shape_cast %72 : vector<8xf32> to vector<8x1xf32>
    %74 = arith.minimumf %50, %73 : vector<8x1xf32>
    %cst_23 = arith.constant dense<0xFF800000> : vector<8xf32>
    %75 = vector.multi_reduction <maximumf>, %71, %cst_23 [1] : vector<8x256xf32> to vector<8xf32>
    %76 = vector.shape_cast %75 : vector<8xf32> to vector<8x1xf32>
    %77 = arith.maximumf %51, %76 : vector<8x1xf32>
    %cst_24 = arith.constant 2.989000e-01 : f32
    %78 = vector.broadcast %cst_24 : f32 to vector<8x256xf32>
    %79 = arith.mulf %78, %71 : vector<8x256xf32>
    %80 = arith.addf %49, %79 : vector<8x256xf32>
    %c0_25 = arith.constant 0 : index
    %c1 = arith.constant 1 : index
    %c0_26 = arith.constant 0 : index
    %c0_27 = arith.constant 0 : index
    %81 = vector.load %arg1[%c0_25, %c1, %c0_26, %c0_27] : memref<1x3x8x256xf32, #tpu.memory_space<vmem>>, vector<1x1x8x256xf32>
    %82 = vector.shape_cast %81 : vector<1x1x8x256xf32> to vector<8x256xf32>
    %83 = arith.mulf %15, %82 : vector<8x256xf32>
    %c7_i32_28 = arith.constant 7 : i32
    %84 = tpu.dynamic_rotate %82 by %c7_i32_28 dim 0 : vector<8x256xf32>, i32 -> vector<8x256xf32>
    %85 = arith.mulf %26, %84 : vector<8x256xf32>
    %86 = arith.addf %83, %85 : vector<8x256xf32>
    %c6_i32_29 = arith.constant 6 : i32
    %87 = tpu.dynamic_rotate %82 by %c6_i32_29 dim 0 : vector<8x256xf32>, i32 -> vector<8x256xf32>
    %88 = arith.mulf %37, %87 : vector<8x256xf32>
    %89 = arith.addf %86, %88 : vector<8x256xf32>
    %c5_i32_30 = arith.constant 5 : i32
    %90 = tpu.dynamic_rotate %82 by %c5_i32_30 dim 0 : vector<8x256xf32>, i32 -> vector<8x256xf32>
    %91 = arith.mulf %48, %90 : vector<8x256xf32>
    %92 = arith.addf %89, %91 : vector<8x256xf32>
    %cst_31 = arith.constant 5.000000e-01 : f32
    %93 = vector.broadcast %cst_31 : f32 to vector<8x256xf32>
    %94 = arith.mulf %93, %92 : vector<8x256xf32>
    %cst_32 = arith.constant 0.707106769 : f32
    %95 = vector.broadcast %cst_32 : f32 to vector<8x256xf32>
    %96 = arith.mulf %92, %95 : vector<8x256xf32>
    %97 = math.erf %96 : vector<8x256xf32>
    %cst_33 = arith.constant 1.000000e+00 : f32
    %98 = vector.broadcast %cst_33 : f32 to vector<8x256xf32>
    %99 = arith.addf %98, %97 : vector<8x256xf32>
    %100 = arith.mulf %94, %99 : vector<8x256xf32>
    %cst_34 = arith.constant dense<0x7F800000> : vector<8xf32>
    %101 = vector.multi_reduction <minimumf>, %100, %cst_34 [1] : vector<8x256xf32> to vector<8xf32>
    %102 = vector.shape_cast %101 : vector<8xf32> to vector<8x1xf32>
    %103 = arith.minimumf %74, %102 : vector<8x1xf32>
    %cst_35 = arith.constant dense<0xFF800000> : vector<8xf32>
    %104 = vector.multi_reduction <maximumf>, %100, %cst_35 [1] : vector<8x256xf32> to vector<8xf32>
    %105 = vector.shape_cast %104 : vector<8xf32> to vector<8x1xf32>
    %106 = arith.maximumf %77, %105 : vector<8x1xf32>
    %cst_36 = arith.constant 5.870000e-01 : f32
    %107 = vector.broadcast %cst_36 : f32 to vector<8x256xf32>
    %108 = arith.mulf %107, %100 : vector<8x256xf32>
    %109 = arith.addf %80, %108 : vector<8x256xf32>
    %c0_37 = arith.constant 0 : index
    %c2 = arith.constant 2 : index
    %c0_38 = arith.constant 0 : index
    %c0_39 = arith.constant 0 : index
    %110 = vector.load %arg1[%c0_37, %c2, %c0_38, %c0_39] : memref<1x3x8x256xf32, #tpu.memory_space<vmem>>, vector<1x1x8x256xf32>
    %111 = vector.shape_cast %110 : vector<1x1x8x256xf32> to vector<8x256xf32>
    %112 = arith.mulf %15, %111 : vector<8x256xf32>
    %c7_i32_40 = arith.constant 7 : i32
    %113 = tpu.dynamic_rotate %111 by %c7_i32_40 dim 0 : vector<8x256xf32>, i32 -> vector<8x256xf32>
    %114 = arith.mulf %26, %113 : vector<8x256xf32>
    %115 = arith.addf %112, %114 : vector<8x256xf32>
    %c6_i32_41 = arith.constant 6 : i32
    %116 = tpu.dynamic_rotate %111 by %c6_i32_41 dim 0 : vector<8x256xf32>, i32 -> vector<8x256xf32>
    %117 = arith.mulf %37, %116 : vector<8x256xf32>
    %118 = arith.addf %115, %117 : vector<8x256xf32>
    %c5_i32_42 = arith.constant 5 : i32
    %119 = tpu.dynamic_rotate %111 by %c5_i32_42 dim 0 : vector<8x256xf32>, i32 -> vector<8x256xf32>
    %120 = arith.mulf %48, %119 : vector<8x256xf32>
    %121 = arith.addf %118, %120 : vector<8x256xf32>
    %cst_43 = arith.constant 5.000000e-01 : f32
    %122 = vector.broadcast %cst_43 : f32 to vector<8x256xf32>
    %123 = arith.mulf %122, %121 : vector<8x256xf32>
    %cst_44 = arith.constant 0.707106769 : f32
    %124 = vector.broadcast %cst_44 : f32 to vector<8x256xf32>
    %125 = arith.mulf %121, %124 : vector<8x256xf32>
    %126 = math.erf %125 : vector<8x256xf32>
    %cst_45 = arith.constant 1.000000e+00 : f32
    %127 = vector.broadcast %cst_45 : f32 to vector<8x256xf32>
    %128 = arith.addf %127, %126 : vector<8x256xf32>
    %129 = arith.mulf %123, %128 : vector<8x256xf32>
    %cst_46 = arith.constant dense<0x7F800000> : vector<8xf32>
    %130 = vector.multi_reduction <minimumf>, %129, %cst_46 [1] : vector<8x256xf32> to vector<8xf32>
    %131 = vector.shape_cast %130 : vector<8xf32> to vector<8x1xf32>
    %132 = arith.minimumf %103, %131 : vector<8x1xf32>
    %cst_47 = arith.constant dense<0xFF800000> : vector<8xf32>
    %133 = vector.multi_reduction <maximumf>, %129, %cst_47 [1] : vector<8x256xf32> to vector<8xf32>
    %134 = vector.shape_cast %133 : vector<8xf32> to vector<8x1xf32>
    %135 = arith.maximumf %106, %134 : vector<8x1xf32>
    %cst_48 = arith.constant 1.140000e-01 : f32
    %136 = vector.broadcast %cst_48 : f32 to vector<8x256xf32>
    %137 = arith.mulf %136, %129 : vector<8x256xf32>
    %138 = arith.addf %109, %137 : vector<8x256xf32>
    %cst_49 = arith.constant 0.000000e+00 : f32
    %139 = vector.broadcast %cst_49 : f32 to vector<3x256xf32>
    %140 = tpu.concatenate %139, %138 in 0 : vector<3x256xf32>, vector<8x256xf32> -> vector<11x256xf32>
    %c0_50 = arith.constant 0 : index
    %c0_51 = arith.constant 0 : index
    %c0_52 = arith.constant 0 : index
    %141 = vector.load %arg2[%c0_50, %c0_51, %c0_52] : memref<1x11x256xf32, #tpu.memory_space<vmem>>, vector<1x11x256xf32>
    %142 = vector.shape_cast %141 : vector<1x11x256xf32> to vector<11x256xf32>
    %143 = vector.shape_cast %140 : vector<11x256xf32> to vector<1x11x256xf32>
    tpu.vector_store %arg2[%c0_50, %c0_51, %c0_52], %143 {strides = array<i32>} : memref<1x11x256xf32, #tpu.memory_space<vmem>>, vector<1x11x256xf32>,
    %c0_53 = arith.constant 0 : index
    %c0_54 = arith.constant 0 : index
    %c0_55 = arith.constant 0 : index
    %144 = vector.load %arg3[%c0_53, %c0_54, %c0_55] : memref<1x8x1xf32, #tpu.memory_space<vmem>>, vector<1x8x1xf32>
    %145 = vector.shape_cast %144 : vector<1x8x1xf32> to vector<8x1xf32>
    %146 = vector.shape_cast %132 : vector<8x1xf32> to vector<1x8x1xf32>
    tpu.vector_store %arg3[%c0_53, %c0_54, %c0_55], %146 {strides = array<i32>} : memref<1x8x1xf32, #tpu.memory_space<vmem>>, vector<1x8x1xf32>,
    %c0_56 = arith.constant 0 : index
    %c0_57 = arith.constant 0 : index
    %c0_58 = arith.constant 0 : index
    %147 = vector.load %arg4[%c0_56, %c0_57, %c0_58] : memref<1x8x1xf32, #tpu.memory_space<vmem>>, vector<1x8x1xf32>
    %148 = vector.shape_cast %147 : vector<1x8x1xf32> to vector<8x1xf32>
    %149 = vector.shape_cast %135 : vector<8x1xf32> to vector<1x8x1xf32>
    tpu.vector_store %arg4[%c0_56, %c0_57, %c0_58], %149 {strides = array<i32>} : memref<1x8x1xf32, #tpu.memory_space<vmem>>, vector<1x8x1xf32>,
    return
  }
  func.func @transform_0(%arg0: i32) -> (i32, i32, i32, i32) {
    %c0_i32 = arith.constant 0 : i32
    %c0_i32_0 = arith.constant 0 : i32
    %c0_i32_1 = arith.constant 0 : i32
    %c0_i32_2 = arith.constant 0 : i32
    return %arg0, %c0_i32, %c0_i32_0, %c0_i32_1 : i32, i32, i32, i32
  }
  func.func @transform_1(%arg0: i32) -> (i32, i32, i32) {
    %c0_i32 = arith.constant 0 : i32
    %c0_i32_0 = arith.constant 0 : i32
    %c0_i32_1 = arith.constant 0 : i32
    return %arg0, %c0_i32, %c0_i32_0 : i32, i32, i32
  }
  func.func @transform_2(%arg0: i32) -> (i32, i32, i32) {
    %c0_i32 = arith.constant 0 : i32
    %c0_i32_0 = arith.constant 0 : i32
    %c0_i32_1 = arith.constant 0 : i32
    return %arg0, %c0_i32, %c0_i32_0 : i32, i32, i32
  }
  func.func @transform_3(%arg0: i32) -> (i32, i32, i32) {
    %c0_i32 = arith.constant 0 : i32
    %c0_i32_0 = arith.constant 0 : i32
    %c0_i32_1 = arith.constant 0 : i32
    return %arg0, %c0_i32, %c0_i32_0 : i32, i32, i32
  }
}

module attributes {stable_mosaic.version = 11 : i64} {
  func.func @norm_kernel(%arg0: i32, %arg1: memref<11x1xf32, #tpu.memory_space<vmem>>, %arg2: memref<11x1xf32, #tpu.memory_space<vmem>>, %arg3: memref<1x11x256xf32, #tpu.memory_space<vmem>>, %arg4: memref<1x11x256xf32, #tpu.memory_space<vmem>>) attributes {dimension_semantics = [#tpu.dimension_semantics<parallel>], iteration_bounds = array<i64: 2>, scalar_prefetch = 0 : i64, scratch_operands = 0 : i64, tpu.core_type = #tpu.core_type<tc>, window_params = [{pipeline_mode = #tpu.pipeline_mode<synchronous>, transform_indices = @transform_0, window_bounds = array<i64: 11, 1>}, {pipeline_mode = #tpu.pipeline_mode<synchronous>, transform_indices = @transform_1, window_bounds = array<i64: 11, 1>}, {transform_indices = @transform_2, window_bounds = array<i64: 1, 11, 256>}, {transform_indices = @transform_3, window_bounds = array<i64: 1, 11, 256>}]} {
    %c0 = arith.constant 0 : index
    %c0_0 = arith.constant 0 : index
    %c0_1 = arith.constant 0 : index
    %0 = vector.load %arg3[%c0, %c0_0, %c0_1] : memref<1x11x256xf32, #tpu.memory_space<vmem>>, vector<1x11x256xf32>
    %1 = vector.shape_cast %0 : vector<1x11x256xf32> to vector<11x256xf32>
    %c0_2 = arith.constant 0 : index
    %c0_3 = arith.constant 0 : index
    %2 = vector.load %arg2[%c0_2, %c0_3] : memref<11x1xf32, #tpu.memory_space<vmem>>, vector<11x1xf32>
    %3 = vector.broadcast %2 : vector<11x1xf32> to vector<11x256xf32>
    %4 = arith.subf %1, %3 : vector<11x256xf32>
    %c0_4 = arith.constant 0 : index
    %c0_5 = arith.constant 0 : index
    %5 = vector.load %arg1[%c0_4, %c0_5] : memref<11x1xf32, #tpu.memory_space<vmem>>, vector<11x1xf32>
    %6 = vector.broadcast %5 : vector<11x1xf32> to vector<11x256xf32>
    %7 = arith.mulf %4, %6 : vector<11x256xf32>
    %c0_6 = arith.constant 0 : index
    %c0_7 = arith.constant 0 : index
    %c0_8 = arith.constant 0 : index
    %8 = vector.load %arg4[%c0_6, %c0_7, %c0_8] : memref<1x11x256xf32, #tpu.memory_space<vmem>>, vector<1x11x256xf32>
    %9 = vector.shape_cast %8 : vector<1x11x256xf32> to vector<11x256xf32>
    %10 = vector.shape_cast %7 : vector<11x256xf32> to vector<1x11x256xf32>
    tpu.vector_store %arg4[%c0_6, %c0_7, %c0_8], %10 {strides = array<i32>} : memref<1x11x256xf32, #tpu.memory_space<vmem>>, vector<1x11x256xf32>,
    return
  }
  func.func @transform_0(%arg0: i32) -> (i32, i32) {
    %c0_i32 = arith.constant 0 : i32
    %c0_i32_0 = arith.constant 0 : i32
    %c0_i32_1 = arith.constant 0 : i32
    return %c0_i32, %c0_i32_0 : i32, i32
  }
  func.func @transform_1(%arg0: i32) -> (i32, i32) {
    %c0_i32 = arith.constant 0 : i32
    %c0_i32_0 = arith.constant 0 : i32
    %c0_i32_1 = arith.constant 0 : i32
    return %c0_i32, %c0_i32_0 : i32, i32
  }
  func.func @transform_2(%arg0: i32) -> (i32, i32, i32) {
    %c0_i32 = arith.constant 0 : i32
    %c0_i32_0 = arith.constant 0 : i32
    %c0_i32_1 = arith.constant 0 : i32
    return %arg0, %c0_i32, %c0_i32_0 : i32, i32, i32
  }
  func.func @transform_3(%arg0: i32) -> (i32, i32, i32) {
    %c0_i32 = arith.constant 0 : i32
    %c0_i32_0 = arith.constant 0 : i32
    %c0_i32_1 = arith.constant 0 : i32
    return %arg0, %c0_i32, %c0_i32_0 : i32, i32, i32
  }
}

</mosaic_0001>

<bundles_post_ra>
// kernel: frp_forward.3
= control target key start
LH: loop header
LB: loop body
LE: loop exit
PB: predicated region body
PF: predicated region fallthrough
CT: control target
= control target key end

     0   :  { %s319_s12 = smov 0   ;;  %s348_s0 = inlined_call_operand.vmem [shape: f32[11,1], index: 0, kind: input, shape index: {}]   ;;  %s349_s1 = inlined_call_operand.vmem [shape: f32[11,1], index: 1, kind: input, shape index: {}]   ;;  %s350_s2 = inlined_call_operand.vmem [shape: f32[2,11,256], index: 2, kind: input, shape index: {}, may-alias: {2,3}]   ;;  %s351_s3 = inlined_call_operand.vmem [shape: f32[2,11,256], index: 3, kind: output, shape index: {}, may-alias: {2,3}]  }
   0x1 LB: > { %s266_s13 = sadd.s32 4294967295, %s296_s12   ;;  %p270_p0 = scmp.ge.s32.totalorder %s296_s12, 1  ;;  %s296_s12 = sphi %s319_s12, %s13_s12  }
   0x2   : > { %p137_p1 = scmp.lt.s32.totalorder %s296_s12, 3 }
   0x4   : > { %p138_p2 = pnand %p270_p0, %p137_p1 }
   0x5   : > { %p161_p3 = scmp.lt.s32.totalorder (!%p138_p2), %s266_s13, 1 }
   0x6   : > { %141 = sbr.rel (%p138_p2) target bundleno = 142 (0x8e), region = 32 }
   0xb   : > { %v191_v0 = vld [vmem:[%s348_s0] sm:$0xff]  ;;  %v298_v2 = vmov 0   ;;  %v192_v3 = vld [vmem:[%s348_s0 + $0x8] sm:$0x7]  ;;  %s353_s13 = smov (!%p161_p3, %s266_s13), 1 }
   0xc   : > { %v175_v1 = vld [vmem:[%s349_s1] sm:$0xff]  ;;  %289 = vset.pattern.permute.xlu1 %v298_v2  ;;  %288 = vset.pattern.permute.xlu0 %v298_v2  ;;  %v176_v4 = vld [vmem:[%s349_s1 + $0x8] sm:$0x7]  ;;  %s277_s22 = sshll.u32 %s353_s13, 5 }
   0xd   : > { %195 = vperm.xlu1 %289, %v191_v0   ;;  %179 = vperm.xlu0 %288, %v175_v1   ;;  %s165_s25 = scalar_lea.vmem %s350_s2, %s277_s22  ;;  %s170_s28 = scalar_lea.vmem %s351_s3, %s277_s22 }
   0xe   : > { %v171_v5 = vld [vmem:[%s165_s25] sm:$0xff]  ;;  %v172_v6 = vld [vmem:[%s165_s25 + $0x8] sm:$0xff]  ;;  %v173_v11 = vld [vmem:[%s165_s25 + $0x10] sm:$0x7] }
   0xf   : > { %v174_v12 = vld [vmem:[%s165_s25 + $0x18] sm:$0x7] }
  0x15   : > { %200 = vperm.xlu1 %289, %v192_v3   ;;  %184 = vperm.xlu0 %288, %v176_v4  }
  0x7f   : > { %v196_v7 = vpop.permute.xlu1 %195  ;;  %v180_v8 = vpop.permute.xlu0 %179 }
  0x80   : > { %v187_v9 = vsub.f32 %v171_v5, %v180_v8  ;;  %v188_v10 = vsub.f32 %v172_v6, %v180_v8 }
  0x82   : > { %v203_v13 = vmul.f32 %v196_v7, %v187_v9  ;;  %v204_v14 = vmul.f32 %v196_v7, %v188_v10 }
  0x84   : > { %207 = vst [vmem:[%s170_s28] sm:$0xff] %v203_v13 }
  0x85   : > { %208 = vst [vmem:[%s170_s28 + $0x8] sm:$0xff] %v204_v14 }
  0x87   : > { %v185_v15 = vpop.permute.xlu0 %184  ;;  %v201_v18 = vpop.permute.xlu1 %200 }
  0x88   : > { %v189_v16 = vsub.f32 %v173_v11, %v185_v15  ;;  %v190_v17 = vsub.f32 %v174_v12, %v185_v15 }
  0x8a   : > { %v205_v19 = vmul.f32 %v201_v18, %v189_v16  ;;  %v206_v20 = vmul.f32 %v201_v18, %v190_v17 }
  0x8c   : > { %209 = vst [vmem:[%s170_s28 + $0x10] sm:$0x7] %v205_v19 }
  0x8d   : > { %210 = vst [vmem:[%s170_s28 + $0x18] sm:$0x7] %v206_v20 }
  0x8e PF: > { %s13_s12 = sadd.s32 1, %s296_s12  }
  0x8f   : > { %p10_p4 = scmp.ge.s32.totalorder %s13_s12, 4  }
  0x91   :  { %12 = sbr.rel (!%p10_p4) target bundleno = 1 (0x1), region = 62 }

// kernel: frp_forward.2
= control target key start
LH: loop header
LB: loop body
LE: loop exit
PB: predicated region body
PF: predicated region fallthrough
CT: control target
= control target key end

     0   :  { %s792_s12 = smov 0   ;;  %s1055_s0 = inlined_call_operand.vmem [shape: f32[2,3,8,256], index: 0, kind: input, shape index: {}]   ;;  %s1056_s1 = inlined_call_operand.vmem [shape: f32[2,11,256], index: 1, kind: output, shape index: {0}]   ;;  %s1057_s2 = inlined_call_operand.vmem [shape: f32[2,8,1], index: 2, kind: output, shape index: {1}]   ;;  %s1058_s3 = inlined_call_operand.vmem [shape: f32[2,8,1], index: 3, kind: output, shape index: {2}]  }
   0x1 LB: > { %s716_s13 = sadd.s32 4294967295, %s770_s12   ;;  %p720_p0 = scmp.ge.s32.totalorder %s770_s12, 1  ;;  %s770_s12 = sphi %s792_s12, %s14_s12  }
   0x2   : > { %p142_p1 = scmp.lt.s32.totalorder %s770_s12, 3 }
   0x4   : > { %p143_p2 = pnand %p720_p0, %p142_p1 }
   0x5   : > { %p174_p3 = scmp.lt.s32.totalorder (!%p143_p2), %s716_s13, 1 }
   0x6   : > { %146 = sbr.rel (%p143_p2) target bundleno = 255 (0xff), region = 24 }
   0xb   : > { %v192_v0 = vlaneseq  ;;  %s1074_s13 = smov (!%p174_p3, %s716_s13), 1 }
   0xc   : > { %s743_s14 = smul.u32 48, %s1074_s13  ;;  %s742_s18 = sshll.u32 %s1074_s13, 5 }
   0xd   : > { %v193_v1 = vshrl.u32 %v192_v0, 7  ;;  %s183_s21 = scalar_lea.vmem %s1056_s1, %s742_s18  ;;  %s724_s22 = sshll.u32 %s1074_s13, 3 }
   0xe   : > { %s806_s17 = scalar_lea.vmem %s1055_s0, %s743_s14  ;;  %s187_s25 = scalar_lea.vmem %s1057_s2, %s724_s22 }
   0xf   : > { %v194_v2 = vsub.s32 8, %v193_v1  ;;  %vm205_vm1 = vcmp.lt.s32.totalorder %v193_v1, 7  ;;  %vm210_vm2 = vcmp.lt.s32.totalorder %v193_v1, 6  ;;  %vm215_vm3 = vcmp.lt.s32.totalorder %v193_v1, 5  ;;  %v732_v4 = vld [vmem:[%s806_s17 + $0x10] sm:$0xff]  ;;  %v733_v5 = vld [vmem:[%s806_s17 + $0x18] sm:$0xff]  ;;  %s191_s28 = scalar_lea.vmem %s1058_s3, %s724_s22 }
  0x10   : > { %v217_v10 = vld [vmem:[%s806_s17] sm:$0xff]  ;;  %v218_v11 = vld [vmem:[%s806_s17 + $0x8] sm:$0xff]  ;;  %v342_v12 = vrot.slane %v732_v4, 1  ;;  %v343_v13 = vrot.slane %v733_v5, 1  ;;  %v348_v14 = vrot.slane %v732_v4, 2  ;;  %v349_v15 = vrot.slane %v733_v5, 2 }
  0x11   : > { %vm195_vm0 = vcmp.lt.s32.totalorder %v194_v2, 4  ;;  %v354_v20 = vrot.slane %v732_v4, 3  ;;  %v355_v21 = vrot.slane %v733_v5, 3  ;;  %v221_v22 = vrot.slane %v217_v10, 1  ;;  %v826_v54 = vld [vmem:[%s806_s17 + $0x20] sm:$0xff]  ;;  %v835_v62 = vld [vmem:[%s806_s17 + $0x28] sm:$0xff] }
  0x12   : > { %v196_v3 = vsel %vm195_vm0, %v194_v2, 4  ;;  %v222_v23 = vrot.slane %v218_v11, 1  ;;  %v227_v28 = vrot.slane %v217_v10, 2  ;;  %v228_v29 = vrot.slane %v218_v11, 2 }
  0x13   : > { %v197_v6 = vsub.s32 2, %v196_v3  ;;  %v202_v7 = vsub.s32 4, %v196_v3  ;;  %v207_v8 = vsub.s32 6, %v196_v3  ;;  %v212_v9 = vsub.s32 8, %v196_v3 }
  0x14   : > { %v233_v30 = vrot.slane %v217_v10, 3  ;;  %v234_v31 = vrot.slane %v218_v11, 3  ;;  %v465_v63 = vrot.slane %v826_v54, 1 }
  0x15   : > { %v726_v16 = vadd.s32 4294967295, %v197_v6  ;;  %v727_v17 = vadd.s32 4294967295, %v202_v7  ;;  %v728_v18 = vadd.s32 4294967295, %v207_v8  ;;  %v729_v19 = vadd.s32 4294967295, %v212_v9 }
  0x16   : > { %v466_v6 = vrot.slane %v835_v62, 1 }
  0x17   : > { %v199_v24 = vcvt.s32.f32 %v726_v16  ;;  %v204_v25 = vcvt.s32.f32 %v727_v17  ;;  %v209_v26 = vcvt.s32.f32 %v728_v18  ;;  %v214_v27 = vcvt.s32.f32 %v729_v19 }
  0x18   : > { %v472_v17 = vrot.slane %v835_v62, 2 }
  0x19   : > { %v206_v32 = vsel %vm205_vm1, %v204_v25, 0.0  ;;  %v814_v33 = vsel %vm210_vm2, %v209_v26, 0.0  ;;  %v817_v34 = vsel %vm215_vm3, %v214_v27, 0.0  ;;  %v340_v35 = vmul.f32 %v732_v4, %v199_v24 }
  0x1a   : > { %v341_v36 = vmul.f32 %v733_v5, %v199_v24  ;;  %v344_v37 = vmul.f32 %v342_v12, %v206_v32  ;;  %v345_v38 = vmul.f32 %v343_v13, %v206_v32  ;;  %v350_v39 = vmul.f32 %v348_v14, %v814_v33 }
  0x1b   : > { %v351_v40 = vmul.f32 %v349_v15, %v814_v33  ;;  %v356_v41 = vmul.f32 %v354_v20, %v817_v34  ;;  %v357_v42 = vmul.f32 %v355_v21, %v817_v34  ;;  %v219_v43 = vmul.f32 %v217_v10, %v199_v24 }
  0x1c   : > { %v346_v44 = vadd.f32 %v344_v37, %v340_v35  ;;  %v347_v45 = vadd.f32 %v345_v38, %v341_v36  ;;  %v220_v46 = vmul.f32 %v218_v11, %v199_v24  ;;  %v223_v47 = vmul.f32 %v221_v22, %v206_v32 }
  0x1d   : > { %v224_v48 = vmul.f32 %v222_v23, %v206_v32  ;;  %v229_v49 = vmul.f32 %v227_v28, %v814_v33  ;;  %v230_v50 = vmul.f32 %v228_v29, %v814_v33  ;;  %v235_v56 = vmul.f32 %v233_v30, %v817_v34 }
  0x1e   : > { %v352_v51 = vadd.f32 %v350_v39, %v346_v44  ;;  %v353_v52 = vadd.f32 %v351_v40, %v347_v45  ;;  %v225_v53 = vadd.f32 %v223_v47, %v219_v43  ;;  %v236_v57 = vmul.f32 %v234_v31, %v817_v34 }
  0x1f   : > { %v226_v55 = vadd.f32 %v224_v48, %v220_v46  ;;  %v463_v9 = vmul.f32 %v826_v54, %v199_v24  ;;  %v467_v10 = vmul.f32 %v465_v63, %v206_v32  ;;  %v471_v13 = vrot.slane %v826_v54, 2 }
  0x20   : > { %v830_v58 = vadd.f32 %v356_v41, %v352_v51  ;;  %v832_v59 = vadd.f32 %v357_v42, %v353_v52  ;;  %v231_v60 = vadd.f32 %v229_v49, %v225_v53  ;;  %v464_v16 = vmul.f32 %v835_v62, %v199_v24 }
  0x21   : > { %v232_v61 = vadd.f32 %v230_v50, %v226_v55  ;;  %v468_v21 = vmul.f32 %v466_v6, %v206_v32  ;;  %v879_v26 = vadd.f32 %v467_v10, %v463_v9  ;;  %v473_v29 = vmul.f32 %v471_v13, %v814_v33 }
  0x22   : > { %v839_v0 = vmul.f32 0.70710677, %v830_v58  ;;  %v842_v1 = vmul.f32 0.70710677, %v832_v59  ;;  %v844_v2 = vadd.f32 %v235_v56, %v231_v60  ;;  %v474_v32 = vmul.f32 %v472_v17, %v814_v33 }
  0x23   : > { %v846_v3 = vadd.f32 %v236_v57, %v232_v61  ;;  %v470_v47 = vadd.f32 %v468_v21, %v464_v16 }
  0x24   : > { %v364_v4 = vmul.f32 %v839_v0, %v839_v0  ;;  %v404_v5 = vmul.f32 %v842_v1, %v842_v1  ;;  %v854_v7 = vmul.f32 0.70710677, %v844_v2 }
  0x25   : > { %v857_v8 = vmul.f32 0.70710677, %v846_v3 }
  0x26   : > { %v860_v11 = vmin.f32 %v364_v4, 16.0  ;;  %v862_v12 = vmin.f32 %v404_v5, 16.0  ;;  %v243_v14 = vmul.f32 %v854_v7, %v854_v7 }
  0x27   : > { %v283_v15 = vmul.f32 %v857_v8, %v857_v8 }
  0x28   : > { %v366_v18 = vmul.f32 2.1237322e-06, %v860_v11  ;;  %v377_v19 = vmul.f32 3.8918573e-05, %v860_v11  ;;  %v406_v20 = vmul.f32 2.1237322e-06, %v862_v12 }
  0x29   : > { %v417_v22 = vmul.f32 3.8918573e-05, %v862_v12  ;;  %v875_v23 = vmin.f32 %v243_v14, 16.0  ;;  %v877_v25 = vmin.f32 %v283_v15, 16.0 }
  0x2a   : > { %v367_v27 = vadd.f32 0.00028619796, %v366_v18  ;;  %v378_v28 = vadd.f32 0.001143296, %v377_v19  ;;  %v407_v24 = vadd.f32 0.00028619796, %v406_v20 }
  0x2b   : > { %v418_v30 = vadd.f32 0.001143296, %v417_v22  ;;  %v245_v31 = vmul.f32 2.1237322e-06, %v875_v23  ;;  %v256_v35 = vmul.f32 3.8918573e-05, %v875_v23 }
  0x2c   : > { %v368_v36 = vmul.f32 %v367_v27, %v860_v11  ;;  %v379_v37 = vmul.f32 %v378_v28, %v860_v11  ;;  %v408_v38 = vmul.f32 %v407_v24, %v862_v12  ;;  %v285_v39 = vmul.f32 2.1237322e-06, %v877_v25 }
  0x2d   : > { %v419_v40 = vmul.f32 %v418_v30, %v862_v12  ;;  %v246_v41 = vadd.f32 0.00028619796, %v245_v31  ;;  %v257_v42 = vadd.f32 0.001143296, %v256_v35  ;;  %v296_v43 = vmul.f32 3.8918573e-05, %v877_v25 }
  0x2e   : > { %v369_v44 = vadd.f32 0.0036580483, %v368_v36  ;;  %v380_v45 = vadd.f32 0.014752088, %v379_v37  ;;  %v409_v46 = vadd.f32 0.0036580483, %v408_v38 }
  0x2f   : > { %v420_v48 = vadd.f32 0.014752088, %v419_v40  ;;  %v247_v33 = vmul.f32 %v246_v41, %v875_v23  ;;  %v258_v49 = vmul.f32 %v257_v42, %v875_v23  ;;  %v286_v50 = vadd.f32 0.00028619796, %v285_v39 }
  0x30   : > { %v370_v51 = vmul.f32 %v369_v44, %v860_v11  ;;  %v381_v52 = vmul.f32 %v380_v45, %v860_v11  ;;  %v410_v53 = vmul.f32 %v409_v46, %v862_v12  ;;  %v297_v55 = vadd.f32 0.001143296, %v296_v43 }
  0x31   : > { %v421_v56 = vmul.f32 %v420_v48, %v862_v12  ;;  %v248_v57 = vadd.f32 0.0036580483, %v247_v33  ;;  %v259_v60 = vadd.f32 0.014752088, %v258_v49  ;;  %v287_v61 = vmul.f32 %v286_v50, %v877_v25 }
  0x32   : > { %v371_v63 = vadd.f32 0.05243302, %v370_v51  ;;  %v382_v4 = vadd.f32 0.112945676, %v381_v52  ;;  %v411_v5 = vadd.f32 0.05243302, %v410_v53  ;;  %v298_v6 = vmul.f32 %v297_v55, %v877_v25 }
  0x33   : > { %v422_v9 = vadd.f32 0.112945676, %v421_v56  ;;  %v249_v10 = vmul.f32 %v248_v57, %v875_v23  ;;  %v260_v13 = vmul.f32 %v259_v60, %v875_v23  ;;  %v288_v14 = vadd.f32 0.0036580483, %v287_v61 }
  0x34   : > { %v372_v15 = vmul.f32 %v371_v63, %v860_v11  ;;  %v383_v16 = vmul.f32 %v382_v4, %v860_v11  ;;  %v412_v17 = vmul.f32 %v411_v5, %v862_v12  ;;  %v477_v18 = vrot.slane %v826_v54, 3 }
  0x35   : > { %v423_v19 = vmul.f32 %v422_v9, %v862_v12  ;;  %v250_v20 = vadd.f32 0.05243302, %v249_v10  ;;  %v261_v21 = vadd.f32 0.112945676, %v260_v13  ;;  %v478_v22 = vrot.slane %v835_v62, 3 }
  0x36   : > { %v373_v27 = vadd.f32 0.18741608, %v372_v15  ;;  %v384_v28 = vadd.f32 0.4994258, %v383_v16  ;;  %v413_v24 = vadd.f32 0.18741608, %v412_v17  ;;  %v289_v30 = vmul.f32 %v288_v14, %v877_v25 }
  0x37   : > { %v424_v31 = vadd.f32 0.4994258, %v423_v19  ;;  %v251_v35 = vmul.f32 %v250_v20, %v875_v23  ;;  %v262_v36 = vmul.f32 %v261_v21, %v875_v23  ;;  %v299_v37 = vadd.f32 0.014752088, %v298_v6 }
  0x38   : > { %v374_v38 = vmul.f32 %v373_v27, %v860_v11  ;;  %v385_v54 = vmul.f32 %v384_v28, %v860_v11  ;;  %v414_v39 = vmul.f32 %v413_v24, %v862_v12  ;;  %v290_v40 = vadd.f32 0.05243302, %v289_v30 }
  0x39   : > { %v425_v62 = vmul.f32 %v424_v31, %v862_v12  ;;  %v252_v41 = vadd.f32 0.18741608, %v251_v35  ;;  %v263_v42 = vadd.f32 0.4994258, %v262_v36  ;;  %v300_v43 = vmul.f32 %v299_v37, %v877_v25 }
  0x3a   : > { %v386_v44 = vadd.f32 1.0, %v385_v54  ;;  %v475_v45 = vadd.f32 %v473_v29, %v879_v26  ;;  %v476_v46 = vadd.f32 %v474_v32, %v470_v47  ;;  %v479_v48 = vmul.f32 %v477_v18, %v817_v34 }
  0x3b   : > { %v426_v33 = vadd.f32 1.0, %v425_v62  ;;  %v253_v49 = vmul.f32 %v252_v41, %v875_v23  ;;  %v264_v11 = vmul.f32 %v263_v42, %v875_v23  ;;  %v301_v50 = vadd.f32 0.112945676, %v300_v43 }
  0x3c   : > { %v375_v51 = vadd.f32 1.1283791, %v374_v38  ;;  %752 = vrcp.f32 %v386_v44  ;;  %v291_v12 = vmul.f32 %v290_v40, %v877_v25  ;;  %v480_v52 = vmul.f32 %v478_v22, %v817_v34 }
  0x3d   : > { %v922_v53 = vmul.f32 0.5, %v830_v58  ;;  %v396_v55 = vand.u32 2147483647, %v386_v44  ;;  %v415_v26 = vadd.f32 1.1283791, %v414_v39  ;;  %754 = vrcp.f32 %v426_v33 }
  0x3e   : > { %v925_v29 = vmul.f32 0.5, %v832_v59  ;;  %v398_v32 = vand.u32 2147483648, %v386_v44  ;;  %v436_v47 = vand.u32 2147483647, %v426_v33  ;;  %v927_v56 = vadd.f32 %v479_v48, %v475_v45 }
  0x3f   : > { %v438_v23 = vand.u32 2147483648, %v426_v33  ;;  %v254_v57 = vadd.f32 1.1283791, %v253_v49  ;;  %v265_v60 = vadd.f32 1.0, %v264_v11  ;;  %v302_v61 = vmul.f32 %v301_v50, %v877_v25 }
  0x40   : > { %v376_v34 = vmul.f32 %v375_v51, %v839_v0  ;;  %vm392_vm4 = vweird.f32 %v386_v44  ;;  %v292_v58 = vadd.f32 0.18741608, %v291_v12  ;;  %v931_v63 = vadd.f32 %v480_v52, %v476_v46 }
  0x41   : > { %vm933_vm5 = vcmp.eq.f32.partialorder %v396_v55, 8.507059e+37  ;;  %v416_v59 = vmul.f32 %v415_v26, %v842_v1  ;;  %vm432_vm6 = vweird.f32 %v426_v33  ;;  %756 = vrcp.f32 %v265_v60 }
  0x42   : > { %v753_v5 = vpop.eup %752  ;;  %v399_v6 = vor.u32 1.1754944e-38, %v398_v32  ;;  %vm938_vm7 = vcmp.eq.f32.partialorder %v436_v47, 8.507059e+37  ;;  %v303_v10 = vadd.f32 0.4994258, %v302_v61  ;;  %v943_v0 = vmul.f32 0.70710677, %v927_v56 }
  0x43   : > { %v755_v13 = vpop.eup %754  ;;  %v388_v14 = vmul.f32 %v753_v5, %v386_v44  ;;  %v439_v15 = vor.u32 1.1754944e-38, %v438_v23  ;;  %v946_v16 = vmul.f32 %v254_v57, %v854_v7  ;;  %v275_v17 = vand.u32 2147483647, %v265_v60 }
  0x44   : > { %v428_v1 = vmul.f32 %v755_v13, %v426_v33  ;;  %v277_v18 = vand.u32 2147483648, %v265_v60  ;;  %v293_v19 = vmul.f32 %v292_v58, %v877_v25  ;;  %v304_v20 = vmul.f32 %v303_v10, %v877_v25 }
  0x45   : > { %v389_v21 = vsub.f32 1.0, %v388_v14  ;;  %vm393_vm8 = vweird.f32 %v753_v5  ;;  %v951_v22 = vmul.f32 0.70710677, %v931_v63  ;;  %v487_v27 = vmul.f32 %v943_v0, %v943_v0 }
  0x46   : > { %v429_v28 = vsub.f32 1.0, %v428_v1  ;;  %vm433_vm9 = vweird.f32 %v755_v13  ;;  %vm271_vm10 = vweird.f32 %v265_v60  ;;  %v305_v7 = vadd.f32 1.0, %v304_v20  ;;  %vm964_vm12 = vmor %vm392_vm4, %vm393_vm8 }
  0x47   : > { %v757_v24 = vpop.eup %756  ;;  %v390_v30 = vmul.f32 %v753_v5, %v389_v21  ;;  %vm955_vm11 = vcmp.eq.f32.partialorder %v275_v17, 8.507059e+37  ;;  %v959_v35 = vmin.f32 %v487_v27, 16.0  ;;  %v527_v25 = vmul.f32 %v951_v22, %v951_v22  ;;  %vm969_vm13 = vmor %vm432_vm6, %vm433_vm9 }
  0x48   : > { %v430_v37 = vmul.f32 %v755_v13, %v429_v28  ;;  %v267_v38 = vmul.f32 %v757_v24, %v265_v60  ;;  %v278_v54 = vor.u32 1.1754944e-38, %v277_v18  ;;  %758 = vrcp.f32 %v305_v7 }
  0x49   : > { %v391_v39 = vadd.f32 %v753_v5, %v390_v30  ;;  %vm272_vm14 = vweird.f32 %v757_v24  ;;  %v294_v62 = vadd.f32 1.1283791, %v293_v19  ;;  %vm311_vm15 = vweird.f32 %v305_v7 }
  0x4a   : > { %v431_v41 = vadd.f32 %v755_v13, %v430_v37  ;;  %v268_v42 = vsub.f32 1.0, %v267_v38  ;;  %v489_v43 = vmul.f32 2.1237322e-06, %v959_v35  ;;  %v500_v44 = vmul.f32 3.8918573e-05, %v959_v35  ;;  %vm987_vm0 = vmor %vm271_vm10, %vm272_vm14 }
  0x4b   : > { %v395_v45 = vsel %vm964_vm12, %v753_v5, %v391_v39  ;;  %v315_v46 = vand.u32 2147483647, %v305_v7  ;;  %v317_v48 = vand.u32 2147483648, %v305_v7  ;;  %v977_v49 = vmin.f32 %v527_v25, 16.0 }
  0x4c   : > { %v400_v33 = vsel %vm933_vm5, %v399_v6, %v395_v45  ;;  %v435_v11 = vsel %vm969_vm13, %v755_v13, %v431_v41  ;;  %v269_v50 = vmul.f32 %v757_v24, %v268_v42  ;;  %v490_v51 = vadd.f32 0.00028619796, %v489_v43 }
  0x4d   : > { %v401_v12 = vmul.f32 %v400_v33, %v376_v34  ;;  %v440_v52 = vsel %vm938_vm7, %v439_v15, %v435_v11  ;;  %v501_v26 = vadd.f32 0.001143296, %v500_v44  ;;  %v529_v32 = vmul.f32 2.1237322e-06, %v977_v49 }
  0x4e   : > { %v759_v47 = vpop.eup %758  ;;  %v441_v23 = vmul.f32 %v440_v52, %v416_v59  ;;  %v270_v57 = vadd.f32 %v757_v24, %v269_v50  ;;  %v491_v61 = vmul.f32 %v490_v51, %v959_v35  ;;  %v540_v58 = vmul.f32 3.8918573e-05, %v977_v49 }
  0x4f   : > { %v734_v34 = vclamps-f32 %v401_v12, 1.0  ;;  %v307_v4 = vmul.f32 %v759_v47, %v305_v7  ;;  %vm312_vm1 = vweird.f32 %v759_v47  ;;  %v502_v5 = vmul.f32 %v501_v26, %v959_v35 }
  0x50   : > { %v735_v60 = vclamps-f32 %v441_v23, 1.0  ;;  %v274_v6 = vsel %vm987_vm0, %v757_v24, %v270_v57  ;;  %v492_v9 = vadd.f32 0.0036580483, %v491_v61  ;;  %v530_v10 = vadd.f32 0.00028619796, %v529_v32  ;;  %vm1012_vm2 = vmor %vm311_vm15, %vm312_vm1 }
  0x51   : > { %v444_v13 = vadd.f32 1.0, %v734_v34  ;;  %v279_v59 = vsel %vm955_vm11, %v278_v54, %v274_v6  ;;  %v308_v14 = vsub.f32 1.0, %v307_v4  ;;  %v503_v15 = vadd.f32 0.014752088, %v502_v5 }
  0x52   : > { %v445_v17 = vadd.f32 1.0, %v735_v60  ;;  %v280_v1 = vmul.f32 %v279_v59, %v946_v16  ;;  %v493_v18 = vmul.f32 %v492_v9, %v959_v35  ;;  %v531_v19 = vmul.f32 %v530_v10, %v977_v49 }
  0x53   : > { %v1003_v20 = vmul.f32 %v444_v13, %v922_v53  ;;  %v309_v21 = vmul.f32 %v759_v47, %v308_v14  ;;  %v504_v27 = vmul.f32 %v503_v15, %v959_v35  ;;  %v541_v28 = vadd.f32 0.001143296, %v540_v58 }
  0x54   : > { %v1007_v24 = vmul.f32 %v445_v17, %v925_v29  ;;  %v295_v30 = vmul.f32 %v294_v62, %v857_v8  ;;  %vm316_vm3 = vcmp.eq.f32.partialorder %v315_v46, 8.507059e+37  ;;  %v318_v31 = vor.u32 1.1754944e-38, %v317_v48 }
  0x55   : > { %v730_v25 = vclamps-f32 %v280_v1, 1.0  ;;  %v310_v53 = vadd.f32 %v759_v47, %v309_v21  ;;  %v505_v36 = vadd.f32 0.112945676, %v504_v27  ;;  %v542_v37 = vmul.f32 %v541_v28, %v977_v49 }
  0x56   : > { %v448_v38 = vmin.f32 %v1003_v20, %v1007_v24  ;;  %v532_v29 = vadd.f32 0.0036580483, %v531_v19  ;;  %v494_v54 = vadd.f32 0.05243302, %v493_v18  ;;  %v239_v40 = vmul.f32 0.5, %v844_v2 }
  0x57   : > { %v314_v8 = vsel %vm1012_vm2, %v759_v47, %v310_v53  ;;  %v506_v7 = vmul.f32 %v505_v36, %v959_v35  ;;  %v543_v39 = vadd.f32 0.014752088, %v542_v37  ;;  %v323_v42 = vadd.f32 1.0, %v730_v25 }
  0x58   : > { %449 = vmin.xlane.f32.xlu1 %v448_v38  ;;  %v319_v62 = vsel %vm316_vm3, %v318_v31, %v314_v8  ;;  %v240_v45 = vmul.f32 0.5, %v846_v3  ;;  %v533_v46 = vmul.f32 %v532_v29, %v977_v49  ;;  %v495_v33 = vmul.f32 %v494_v54, %v959_v35 }
  0x59   : > { %v320_v41 = vmul.f32 %v319_v62, %v295_v30  ;;  %v507_v43 = vadd.f32 0.4994258, %v506_v7  ;;  %v544_v44 = vmul.f32 %v543_v39, %v977_v49  ;;  %v325_v12 = vmul.f32 %v323_v42, %v239_v40 }
  0x5a   : > { %v534_v55 = vadd.f32 0.05243302, %v533_v46  ;;  %v496_v32 = vadd.f32 0.18741608, %v495_v33  ;;  %v452_v4 = vmax.f32 %v1003_v20, %v1007_v24  ;;  %v456_v36 = vmul.f32 0.587, %v1003_v20 }
  0x5b   : > { %v731_v48 = vclamps-f32 %v320_v41, 1.0  ;;  %v508_v11 = vmul.f32 %v507_v43, %v959_v35  ;;  %v545_v50 = vadd.f32 0.112945676, %v544_v44  ;;  %v333_v37 = vmul.f32 0.2989, %v325_v12 }
  0x5c   : > { %v535_v3 = vmul.f32 %v534_v55, %v977_v49  ;;  %v497_v61 = vmul.f32 %v496_v32, %v959_v35  ;;  %v457_v42 = vmul.f32 0.587, %v1007_v24  ;;  %v484_v20 = vmul.f32 0.5, %v931_v63 }
  0x5d   : > { %v324_v51 = vadd.f32 1.0, %v731_v48  ;;  %v509_v52 = vadd.f32 1.0, %v508_v11  ;;  %v546_v2 = vmul.f32 %v545_v50, %v977_v49  ;;  %v458_v39 = vadd.f32 %v456_v36, %v333_v37 }
  0x5e   : > { %v536_v60 = vadd.f32 0.18741608, %v535_v3  ;;  %v498_v6 = vadd.f32 1.1283791, %v497_v61  ;;  %vm589_vm12 = vcmask 1042432   ;;  %vm596_vm13 = vcmask 7168  }
  0x5f   : > { %v326_v26 = vmul.f32 %v324_v51, %v240_v45  ;;  %760 = vrcp.f32 %v509_v52  ;;  %v547_v47 = vadd.f32 0.4994258, %v546_v2  ;;  %v521_v9 = vand.u32 2147483648, %v509_v52 }
  0x60   : > { %453 = vmax.xlane.f32.xlu1 %v452_v4  ;;  %vm515_vm4 = vweird.f32 %v509_v52  ;;  %v519_v59 = vand.u32 2147483647, %v509_v52  ;;  %v537_v15 = vmul.f32 %v536_v60, %v977_v49  ;;  %v499_v1 = vmul.f32 %v498_v6, %v943_v0 }
  0x61   : > { %v327_v23 = vmin.f32 %v325_v12, %v326_v26  ;;  %v548_v57 = vmul.f32 %v547_v47, %v977_v49  ;;  %v330_v10 = vmax.f32 %v325_v12, %v326_v26  ;;  %v522_v35 = vor.u32 1.1754944e-38, %v521_v9 }
  0x62   : > { %vm520_vm7 = vcmp.eq.f32.partialorder %v519_v59, 8.507059e+37  ;;  %v538_v27 = vadd.f32 1.1283791, %v537_v15  ;;  %v483_v49 = vmul.f32 0.5, %v927_v56  ;;  %v334_v43 = vmul.f32 0.2989, %v326_v26 }
  0x63   : > { %328 = vmin.xlane.f32.xlu0 %v327_v23  ;;  %v549_v58 = vadd.f32 1.0, %v548_v57 }
  0x64   : > { %v539_v29 = vmul.f32 %v538_v27, %v951_v22  ;;  %v459_v48 = vadd.f32 %v457_v42, %v334_v43 }
  0x65   : > { %v761_v34 = vpop.eup %760  ;;  %762 = vrcp.f32 %v549_v58  ;;  %vm555_vm8 = vweird.f32 %v549_v58  ;;  %v561_v28 = vand.u32 2147483648, %v549_v58  ;;  %v559_v31 = vand.u32 2147483647, %v549_v58 }
  0x66   : > { %v511_v5 = vmul.f32 %v761_v34, %v509_v52  ;;  %vm516_vm5 = vweird.f32 %v761_v34 }
  0x67   : > { %vm517_vm6 = vmor %vm515_vm4, %vm516_vm5  ;;  %v562_v38 = vor.u32 1.1754944e-38, %v561_v28  ;;  %vm560_vm11 = vcmp.eq.f32.partialorder %v559_v31, 8.507059e+37 }
  0x68   : > { %v512_v13 = vsub.f32 1.0, %v511_v5 }
  0x6a   : > { %v513_v14 = vmul.f32 %v761_v34, %v512_v13 }
  0x6b   : > { %331 = vmax.xlane.f32.xlu0 %v330_v10  ;;  %v763_v17 = vpop.eup %762 }
  0x6c   : > { %v514_v18 = vadd.f32 %v761_v34, %v513_v14  ;;  %v551_v19 = vmul.f32 %v763_v17, %v549_v58  ;;  %vm556_vm9 = vweird.f32 %v763_v17 }
  0x6d   : > { %vm557_vm10 = vmor %vm555_vm8, %vm556_vm9 }
  0x6e   : > { %v518_v21 = vsel %vm517_vm6, %v761_v34, %v514_v18  ;;  %v552_v16 = vsub.f32 1.0, %v551_v19 }
  0x6f   : > { %v523_v30 = vsel %vm520_vm7, %v522_v35, %v518_v21 }
  0x70   : > { %v524_v25 = vmul.f32 %v523_v30, %v499_v1  ;;  %v553_v53 = vmul.f32 %v763_v17, %v552_v16 }
  0x72   : > { %v738_v0 = vclamps-f32 %v524_v25, 1.0  ;;  %v554_v8 = vadd.f32 %v763_v17, %v553_v53 }
  0x74   : > { %v567_v54 = vadd.f32 1.0, %v738_v0  ;;  %v558_v7 = vsel %vm557_vm10, %v763_v17, %v554_v8 }
  0x75   : > { %v563_v40 = vsel %vm560_vm11, %v562_v38, %v558_v7 }
  0x76   : > { %v569_v62 = vmul.f32 %v567_v54, %v483_v49  ;;  %v564_v41 = vmul.f32 %v563_v40, %v539_v29 }
  0x78   : > { %v579_v56 = vmul.f32 0.114, %v569_v62  ;;  %v739_v44 = vclamps-f32 %v564_v41, 1.0 }
  0x7a   : > { %v581_v45 = vadd.f32 %v579_v56, %v458_v39  ;;  %v568_v22 = vadd.f32 1.0, %v739_v44 }
  0x7c   : > { %v585_v46 = vrot.slane %v581_v45, 5  ;;  %v570_v33 = vmul.f32 %v568_v22, %v484_v20 }
  0x7e   : > { %v590_v11 = vsel %vm589_vm12, 0.0, %v585_v46  ;;  %594 = vst [vmem:[%s183_s21 + $0x10] sm:$0x7] %v585_v46  ;;  %v571_v50 = vmin.f32 %v569_v62, %v570_v33  ;;  %v580_v51 = vmul.f32 0.114, %v570_v33  ;;  %v575_v52 = vmax.f32 %v569_v62, %v570_v33 }
  0x7f   : > { %592 = vst [vmem:[%s183_s21] sm:$0xff] %v590_v11 }
  0x80   : > { %572 = vmin.xlane.f32.xlu2 %v571_v50  ;;  %v582_v24 = vadd.f32 %v580_v51, %v459_v48 }
  0x82   : > { %v586_v63 = vrot.slane %v582_v24, 5 }
  0x84   : > { %v591_v12 = vsel %vm589_vm12, 0.0, %v586_v63  ;;  %595 = vst [vmem:[%s183_s21 + $0x18] sm:$0x7] %v586_v63 }
  0x85   : > { %593 = vst [vmem:[%s183_s21 + $0x8] sm:$0xff] %v591_v12 }
  0x88   : > { %576 = vmax.xlane.f32.xlu2 %v575_v52 }
  0xcb   : > { %v450_v2 = vpop.xlane.xlu1 %449 }
  0xd3   : > { %v454_v23 = vpop.xlane.xlu1 %453 }
  0xd6   : > { %v329_v55 = vpop.xlane.xlu0 %328 }
  0xd7   : > { %v451_v26 = vmin.f32 %v329_v55, %v450_v2 }
  0xde   : > { %v332_v3 = vpop.xlane.xlu0 %331 }
  0xdf   : > { %v455_v57 = vmax.f32 %v332_v3, %v454_v23 }
  0xf3   : > { %v573_v32 = vpop.xlane.xlu2 %572 }
  0xf4   : > { %v574_v47 = vmin.f32 %v451_v26, %v573_v32 }
  0xf6   : > { %597 = vst.msk [vmem:[%s187_s25] sm:$0xff] %vm596_vm13, %v574_v47 }
  0xfb   : > { %v577_v61 = vpop.xlane.xlu2 %576 }
  0xfc   : > { %v578_v58 = vmax.f32 %v455_v57, %v577_v61 }
  0xfe   : > { %598 = vst.msk [vmem:[%s191_s28] sm:$0xff] %vm596_vm13, %v578_v58 }
  0xff PF: > { %s14_s12 = sadd.s32 1, %s770_s12  }
 0x100   : > { %p11_p4 = scmp.ge.s32.totalorder %s14_s12, 4  }
 0x102   :  { %13 = sbr.rel (!%p11_p4) target bundleno = 1 (0x1), region = 80 }

</bundles_post_ra>
